<compile_context>
chip_gen: v7x
topology: tpu7x:2x2x1
jax: 0.10.0
libtpu: 0.0.40
codegen_flags: <defaults>
</compile_context>

<pallas_src>
import functools

import numpy as np
import jax
import jax.numpy as jnp
from jax.experimental import pallas as pl
from jax.experimental.pallas import tpu as pltpu

DEFAULT_COEFFICIENT = 0.97


def _preemphasis_kernel(x_ref, o_ref, carry_ref, *, coefficient):
    """One (bt, tt) block.  Time blocks are visited in reverse order, so
    carry_ref holds x[:, (j+1)*tt] (first column of the next-in-time block)."""
    x = x_ref[...].astype(jnp.float32)          # (bt, cols)
    cols = x.shape[-1]
    out_cols = o_ref.shape[-1]

    if cols % 128 == 0:
        # Optimized path: XLU rotate + carried boundary column.
        @pl.when(pl.program_id(1) == 0)
        def _():
            # First (i.e. last-in-time) block: the carried column only feeds
            # the out-of-range output column, which Pallas masks on store.
            carry_ref[...] = jnp.zeros_like(carry_ref)

        nxt = pltpu.roll(x, shift=cols - 1, axis=1)       # nxt[:, t] = x[:, t+1] (wrapped)
        col_ix = jax.lax.broadcasted_iota(jnp.int32, x.shape, 1)
        nxt = jnp.where(col_ix == cols - 1, carry_ref[...], nxt)
        y = nxt - coefficient * x
        if out_cols == cols:
            o_ref[...] = y.astype(o_ref.dtype)
        else:  # single-time-block case: drop the last (invalid) column
            o_ref[...] = y[:, :out_cols].astype(o_ref.dtype)
        # Carry this block's first input column for the earlier-in-time block.
        carry_ref[...] = x[:, 0:1]
    else:
        # Ragged width fallback (always a single time block).
        o_ref[...] = (x[:, 1:] - coefficient * x[:, :-1]).astype(o_ref.dtype)


def _choose_tiles(b, t, itemsize):
    """Pick (batch_tile, time_tile)."""
    # --- batch (sublane) tile: multiple of 8 dividing b, or full dim ---
    if b <= 8:
        bt = b
    else:
        cap = min(b, 256)
        if b >= 16:
            cap = min(cap, b // 2)      # >= 2 batch blocks -> both v7x TCs busy
        cap = max(8, (cap // 8) * 8)
        bt = b                          # full dim is always legal
        c = cap
        while c >= 8:
            if b % c == 0:
                bt = c
                break
            c -= 8
    # --- time (lane) tile: multiple of 128 dividing t, ~8 MiB per block ---
    budget = 8 * 1024 * 1024
    if t % 128 != 0:
        tt = t                          # keep full time axis in one block
    else:
        target = budget // max(1, bt * itemsize)
        target = max(128, (target // 128) * 128)
        target = min(target, t)
        tt = t
        c = target
        while c >= 128:
            if t % c == 0:
                tt = c
                break
            c -= 128
    return bt, tt


def _preemphasis_2d(x2d, coefficient, block_t=None):
    b, t = x2d.shape
    assert t >= 2, "pre-emphasis needs at least 2 samples along time"
    itemsize = jnp.dtype(x2d.dtype).itemsize

    bt, tt = _choose_tiles(b, t, itemsize)
    if block_t is not None:
        assert t % block_t == 0 and block_t % 128 == 0
        tt = block_t
    gb = b // bt
    gt = t // tt
    out_block_cols = tt if gt > 1 else t - 1

    kernel = functools.partial(_preemphasis_kernel, coefficient=float(coefficient))
    return pl.pallas_call(
        kernel,
        out_shape=jax.ShapeDtypeStruct((b, t - 1), x2d.dtype),
        grid=(gb, gt),
        in_specs=[pl.BlockSpec((bt, tt), lambda i, k: (i, gt - 1 - k))],
        out_specs=pl.BlockSpec((bt, out_block_cols), lambda i, k: (i, gt - 1 - k)),
        scratch_shapes=[pltpu.VMEM((bt, 1), jnp.float32)],
        compiler_params=pltpu.CompilerParams(
            dimension_semantics=("parallel", "arbitrary"),
            vmem_limit_bytes=48 * 1024 * 1024,
        ),
        cost_estimate=pl.CostEstimate(
            flops=2 * b * (t - 1),
            transcendentals=0,
            bytes_accessed=(b * t + b * (t - 1)) * itemsize,
        ),
    )(x2d)


def pre_emphasis(x, coefficient=DEFAULT_COEFFICIENT, *, block_t=None):
    """Mirror of PreEMPHASIS.forward for 1D (T,), 2D (B,T), 3D (B,1,T)."""
    if x.ndim == 1:
        return _preemphasis_2d(x[None, :], coefficient, block_t)[0]
    elif x.ndim == 2:
        y = _preemphasis_2d(x, coefficient, block_t)
        return jnp.squeeze(y)           # matches torch `.squeeze()` after conv1d
    elif x.ndim == 3:
        b, c, t = x.shape
        assert c == 1, "conv1d with a (1,1,2) filter requires a single input channel"
        y = _preemphasis_2d(x.reshape(b, t), coefficient, block_t)
        return y.reshape(b, 1, t - 1)
    else:
        raise ValueError("PreEMPHASIS supports only 1D/2D/3D inputs")


def reference(x, coefficient=DEFAULT_COEFFICIENT):
    """NumPy float64 reference mirroring the PyTorch module."""
    x = np.asarray(x, dtype=np.float64)
    if x.ndim == 1:
        return x[1:] - coefficient * x[:-1]
    if x.ndim == 2:
        return np.squeeze(x[:, 1:] - coefficient * x[:, :-1])
    if x.ndim == 3:
        return x[:, :, 1:] - coefficient * x[:, :, :-1]
    raise ValueError("unsupported rank")


if __name__ == "__main__":
    key = jax.random.PRNGKey(0)
    k1, k2, k3 = jax.random.split(key, 3)

    x3 = jax.random.normal(k1, (2, 1, 512), dtype=jnp.float32)   # (B, 1, T)
    x2 = jax.random.normal(k2, (4, 512), dtype=jnp.float32)      # (B, T)
    x1 = jax.random.normal(k3, (512,), dtype=jnp.float32)        # (T,)

    y3 = jax.block_until_ready(pre_emphasis(x3))
    y2 = jax.block_until_ready(pre_emphasis(x2))
    y1 = jax.block_until_ready(pre_emphasis(x1))
    # Also exercise the time-tiled carry path explicitly (4 time blocks).
    y2_tiled = jax.block_until_ready(pre_emphasis(x2, block_t=128))

    assert y3.shape == (2, 1, 511), y3.shape
    assert y2.shape == (4, 511), y2.shape
    assert y1.shape == (511,), y1.shape
    assert y2_tiled.shape == (4, 511), y2_tiled.shape
    assert np.allclose(np.asarray(y3), reference(x3), rtol=1e-5, atol=1e-5)
    assert np.allclose(np.asarray(y2), reference(x2), rtol=1e-5, atol=1e-5)
    assert np.allclose(np.asarray(y1), reference(x1), rtol=1e-5, atol=1e-5)
    assert np.allclose(np.asarray(y2_tiled), reference(x2), rtol=1e-5, atol=1e-5)

    print("KERNEL_OK")
</pallas_src>

<mosaic_0001>
module attributes {stable_mosaic.version = 11 : i64} {
  func.func @_preemphasis_kernel(%arg0: i32, %arg1: i32, %arg2: memref<2x512xf32, #tpu.memory_space<vmem>>, %arg3: memref<2x511xf32, #tpu.memory_space<vmem>>, %arg4: memref<2x1xf32, #tpu.memory_space<vmem>>) attributes {dimension_semantics = [#tpu.dimension_semantics<parallel>, #tpu.dimension_semantics<arbitrary>], iteration_bounds = array<i64: 1, 1>, scalar_prefetch = 0 : i64, scratch_operands = 1 : i64, tpu.core_type = #tpu.core_type<tc>, window_params = [{transform_indices = @transform_0, window_bounds = array<i64: 2, 512>}, {transform_indices = @transform_1, window_bounds = array<i64: 2, 511>}]} {
    %c0 = arith.constant 0 : index
    %c0_0 = arith.constant 0 : index
    %0 = vector.load %arg2[%c0, %c0_0] : memref<2x512xf32, #tpu.memory_space<vmem>>, vector<2x512xf32>
    %c0_i32 = arith.constant 0 : i32
    %1 = arith.cmpi eq, %arg1, %c0_i32 : i32
    %2 = arith.extui %1 : i1 to i32
    %c0_i32_1 = arith.constant 0 : i32
    %3 = arith.cmpi ne, %2, %c0_i32_1 : i32
    scf.if %3 {
      %cst_9 = arith.constant 0.000000e+00 : f32
      %19 = vector.broadcast %cst_9 : f32 to vector<2x1xf32>
      %c0_10 = arith.constant 0 : index
      %c0_11 = arith.constant 0 : index
      %20 = vector.load %arg4[%c0_10, %c0_11] : memref<2x1xf32, #tpu.memory_space<vmem>>, vector<2x1xf32>
      tpu.vector_store %arg4[%c0_10, %c0_11], %19 {strides = array<i32>} : memref<2x1xf32, #tpu.memory_space<vmem>>, vector<2x1xf32>,
    } else {
    }
    %c511_i32 = arith.constant 511 : i32
    %4 = tpu.dynamic_rotate %0 by %c511_i32 dim 1 : vector<2x512xf32>, i32 -> vector<2x512xf32>
    %5 = tpu.iota {dimensions = array<i32: 1>} : vector<2x512xi32>
    %c511_i32_2 = arith.constant 511 : i32
    %6 = vector.broadcast %c511_i32_2 : i32 to vector<2x512xi32>
    %7 = arith.cmpi eq, %5, %6 : vector<2x512xi32>
    %c0_3 = arith.constant 0 : index
    %c0_4 = arith.constant 0 : index
    %8 = vector.load %arg4[%c0_3, %c0_4] : memref<2x1xf32, #tpu.memory_space<vmem>>, vector<2x1xf32>
    %9 = vector.shape_cast %8 : vector<2x1xf32> to vector<2x1xf32>
    %10 = vector.broadcast %9 : vector<2x1xf32> to vector<2x512xf32>
    %11 = arith.select %7, %10, %4 : vector<2x512xi1>, vector<2x512xf32>
    %cst = arith.constant 9.700000e-01 : f32
    %12 = vector.broadcast %cst : f32 to vector<2x512xf32>
    %13 = arith.mulf %12, %0 : vector<2x512xf32>
    %14 = arith.subf %11, %13 : vector<2x512xf32>
    %15 = vector.extract_strided_slice %14 {offsets = [0, 0], sizes = [2, 511], strides = [1, 1]} : vector<2x512xf32> to vector<2x511xf32>
    %c0_5 = arith.constant 0 : index
    %c0_6 = arith.constant 0 : index
    %16 = vector.load %arg3[%c0_5, %c0_6] : memref<2x511xf32, #tpu.memory_space<vmem>>, vector<2x511xf32>
    tpu.vector_store %arg3[%c0_5, %c0_6], %15 {strides = array<i32>} : memref<2x511xf32, #tpu.memory_space<vmem>>, vector<2x511xf32>,
    %17 = vector.extract_strided_slice %0 {offsets = [0, 0], sizes = [2, 1], strides = [1, 1]} : vector<2x512xf32> to vector<2x1xf32>
    %c0_7 = arith.constant 0 : index
    %c0_8 = arith.constant 0 : index
    %18 = vector.load %arg4[%c0_7, %c0_8] : memref<2x1xf32, #tpu.memory_space<vmem>>, vector<2x1xf32>
    tpu.vector_store %arg4[%c0_7, %c0_8], %17 {strides = array<i32>} : memref<2x1xf32, #tpu.memory_space<vmem>>, vector<2x1xf32>,
    return
  }
  func.func @transform_0(%arg0: i32, %arg1: i32) -> (i32, i32) {
    %c0_i32 = arith.constant 0 : i32
    %0 = arith.subi %c0_i32, %arg1 : i32
    %c0_i32_0 = arith.constant 0 : i32
    return %arg0, %0 : i32, i32
  }
  func.func @transform_1(%arg0: i32, %arg1: i32) -> (i32, i32) {
    %c0_i32 = arith.constant 0 : i32
    %0 = arith.subi %c0_i32, %arg1 : i32
    %c0_i32_0 = arith.constant 0 : i32
    return %arg0, %0 : i32, i32
  }
}

</mosaic_0001>

<bundles_post_ra>
// kernel: tpu_custom_call.1
= control target key start
LH: loop header
LB: loop body
LE: loop exit
PB: predicated region body
PF: predicated region fallthrough
CT: control target
= control target key end

     0   :  { %6 = vsyncpa [#allocation4], 0  ;;  %s271_s0 = inlined_call_operand.hbm [shape: f32[2,512], index: 0, kind: input, shape index: {}]   ;;  %s272_s1 = inlined_call_operand.hbm [shape: f32[2,511], index: 1, kind: output, shape index: {}]  }
   0x1   :  { %7 = vsyncpa [#allocation5], 0  ;;  %s227_s6 = smov [#allocation3]   ;;  %s179_s10 = scalar_lea.hbm %s271_s0, 128 }
   0x2   :  { %s18_s7 = sshll.u32 %s227_s6, 4  ;;  %p180_p0 = scmp.ne.s32.totalorder %s271_s0, %s179_s10  ;;  %s19_s7 = int_to_ptr.vmem [resolvable:$true] %s18_s7 }
   0x3   :  { %p183_p1 = scmp.lt.u32.totalorder %s179_s10, %s271_s0 }
   0x5   :  { %p185_p2 = pnand %p183_p1, %p180_p0 }
   0x7   :  { %188 = shalt.err (!%p185_p2)
}
   0x8   :  { %s189_s15 = scalar_lea.vmem %s19_s7, 128  ;;  %p194_p4 = scmp.lt.s32.totalorder %s19_s7, %s19_s7 }
   0x9   :  { %p190_p3 = scmp.ne.s32.totalorder %s19_s7, %s189_s15  ;;  %p195_p5 = scmp.lt.s32.totalorder %s189_s15, %s189_s15 }
   0xb   :  { %p196_p6 = por %p195_p5, %p194_p4 }
   0xd   :  { %p197_p7 = pnand %p196_p6, %p190_p3 }
   0xf   :  { %200 = shalt.err (!%p197_p7)
}
  0x10   :  { %21 = dma.hbm_to_vmem [thread:$0]  %s271_s0, 128, %s19_s7, [#allocation4]  }
  0x11   :  { %223 = dma.done.wait [#allocation4], 128  }
  0x12   :  { %224 = vsyncadd [#allocation4], 4294967168  ;;  %vm34_vm0 = vcmask 1024   ;;  %v41_v0 = vlaneseq  ;;  %v228_v1 = vmov 0.0   ;;  %v229_v2 = vmov 0   ;;  %v29_v8 = vld [vmem:[#allocation3] sm:$0xff] }
  0x13   :  { %35 = vst.msk [vmem:[#allocation2] sm:$0x3] %vm34_vm0, %v228_v1  ;;  %178 = vset.pattern.permute.xlu0 %v229_v2  ;;  %v230_v3 = vmov 1983009808   ;;  %v37_v10 = vcombine.high %v29_v8, %v29_v8  ;;  %s231_s0 = smov 127   ;;  %vm139_vm3 = vcmask 1041408  }
  0x14   :  { %v39_v4 = vunpack.c.l.s4 %v230_v3  ;;  %v42_v5 = vshrl.u32 %v41_v0, 7  ;;  %v90_v15 = vmul.f32 0.97, %v29_v8  ;;  %v67_v16 = vand.u32 127, %v41_v0  ;;  %s232_s18 = smov [#allocation6]  }
  0x15   :  { %vm140_vm4 = vcmask 1043458   ;;  %vm142_vm6 = vcmask 1045508   ;;  %vm144_vm8 = vcmask 1039366   ;;  %s159_s19 = sshll.u32 %s232_s18, 4  ;;  %s160_s19 = int_to_ptr.vmem [resolvable:$true] %s159_s19 }
  0x16   :  { %v40_v6 = vunpack.c.0.s8 %v39_v4  ;;  %v92_v17 = vcombine.high %v90_v15, %v90_v15  ;;  %v75_v19 = vadd.s32 384, %v67_v16  ;;  %vm68_vm1 = vcmp.lt.s32.totalorder %v67_v16, 127  ;;  %vm141_vm5 = vmor %vm140_vm4, %vm139_vm3  ;;  %s201_s20 = scalar_lea.vmem %s160_s19, 128  ;;  %p206_p9 = scmp.lt.s32.totalorder %s160_s19, %s160_s19 }
  0x17   :  { %vm143_vm7 = vmor %vm142_vm6, %vm141_vm5  ;;  %p202_p8 = scmp.ne.s32.totalorder %s160_s19, %s201_s20  ;;  %p207_p10 = scmp.lt.s32.totalorder %s201_s20, %s201_s20 }
  0x18   :  { %v43_v7 = vsub.s32 %v40_v6, %v42_v5  ;;  %vm79_vm2 = vcmp.eq.s32.totalorder %v75_v19, 511  ;;  %vm145_vm9 = vmor %vm144_vm8, %vm143_vm7 }
  0x19   :  { %p208_p11 = por %p207_p10, %p206_p9 }
  0x1a   :  { %v80_v9 = vld [vmem:[#allocation2] sm:$0x3]  ;;  %v51_v11 = vrot.slane %v37_v10, %v43_v7  ;;  %v44_v12 = vrot.slane %v29_v8, %v43_v7  ;;  %v106_v20 = vrot.slane %v92_v17, %v43_v7  ;;  %v99_v22 = vrot.slane %v90_v15, %v43_v7 }
  0x1b   :  { %83 = vperm.xlu0 %178, %v80_v9   ;;  %148 = vst.msk [vmem:[#allocation2] sm:$0x3] %vm34_vm0, %v29_v8  ;;  %p209_p12 = pnand %p208_p11, %p202_p8 }
  0x1c   :  { %v53_v13 = vcombine.high %v51_v11, %v51_v11  ;;  %v52_v14 = vcombine.high %v44_v12, %v44_v12  ;;  %v108_v24 = vcombine.high %v106_v20, %v106_v20  ;;  %v107_v28 = vcombine.high %v99_v22, %v99_v22 }
  0x1e   :  { %64 = vrot.lane.b32.xlu1 %v53_v13, %s231_s0 }
  0x1f   :  { %58 = vrot.lane.b32.xlu0 %v44_v12, %s231_s0 }
  0x22   :  { %60 = vrot.lane.b32.xlu1 %v52_v14, %s231_s0 }
  0x23   :  { %62 = vrot.lane.b32.xlu0 %v51_v11, %s231_s0 }
  0x90   :  { %v65_v18 = vpop.permute.xlu1 %64 }
  0x94   :  { %v61_v23 = vpop.permute.xlu1 %60 }
  0x9a   :  { %v84_v21 = vpop.permute.xlu0 %83 }
  0x9e   :  { %v59_v25 = vpop.permute.xlu0 %58 }
  0x9f   :  { %v72_v26 = vsel %vm68_vm1, %v65_v18, %v59_v25  ;;  %v71_v27 = vsel %vm68_vm1, %v59_v25, %v61_v23 }
  0xa0   :  { %v89_v29 = vsel %vm79_vm2, %v84_v21, %v72_v26  ;;  %v113_v30 = vsub.f32 %v71_v27, %v99_v22 }
  0xa1   :  { %v116_v31 = vsub.f32 %v89_v29, %v108_v24 }
  0xa2   :  { %v63_v32 = vpop.permute.xlu0 %62 }
  0xa3   :  { %v69_v33 = vsel %vm68_vm1, %v63_v32, %v65_v18  ;;  %v70_v34 = vsel %vm68_vm1, %v61_v23, %v63_v32 }
  0xa4   :  { %v114_v35 = vsub.f32 %v70_v34, %v107_v28  ;;  %v115_v36 = vsub.f32 %v69_v33, %v106_v20 }
  0xa6   :  { %v121_v37 = vcombine.low %v113_v30, %v114_v35  ;;  %v122_v38 = vcombine.low %v115_v36, %v116_v31 }
  0xa8   :  { %v129_v39 = vrot.slane %v121_v37, %v43_v7  ;;  %v136_v40 = vrot.slane %v122_v38, %v43_v7 }
  0xaa   :  { %v137_v41 = vcombine.low %v129_v39, %v136_v40 }
  0xac   :  { %146 = vst.msk [vmem:[#allocation6] sm:$0xff] %vm145_vm9, %v137_v41 }
  0xad   :  { %212 = shalt.err (!%p209_p12)
}
  0xae   :  { %s213_s23 = scalar_lea.hbm %s272_s1, 128 }
  0xaf   :  { %p214_p13 = scmp.ne.s32.totalorder %s272_s1, %s213_s23  ;;  %p217_p0 = scmp.lt.u32.totalorder %s213_s23, %s272_s1 }
  0xb1   :  { %p219_p1 = pnand %p217_p0, %p214_p13 }
  0xb3   :  { %222 = shalt.err (!%p219_p1)
}
  0xb4   :  { %162 = dma.vmem_to_hbm [thread:$0]  %s160_s19, 128, %s272_s1, [#allocation5]  }
  0xb5   :  { %225 = dma.done.wait [#allocation5], 128  }
  0xb6   :  { %226 = vsyncadd [#allocation5], 4294967168 }
  0xb7   :  { %166 = vsyncpa [#allocation4], 1 }
  0xb8   :  { %167 = vsyncpa [#allocation5], 1 }

</bundles_post_ra>
